<compile_context>
chip_gen: v5e
topology: v5e:2x2
jax: 0.10.0
libtpu: 0.0.40
codegen_flags: <defaults>
</compile_context>

<pallas_src>
import jax
import jax.numpy as jnp
from jax.experimental import pallas as pl
from jax.experimental.pallas import tpu as pltpu


# ---------------------------------------------------------------------------
# Pallas kernel: streamed lane-dense sigmoid "matvec" over the batch tiles
# ---------------------------------------------------------------------------
def dendro_logreg_kernel(wd_ref, xt_ref, o_ref):
    # wd_ref: (F, 1)  f32, (w_class1 - w_class0), constant across the grid
    # xt_ref: (F, TB) f32, features on sublanes, batch on lanes (lane-dense)
    # o_ref : (2, TB) f32, row 0 = p(class0), row 1 = p(class1)
    d = jnp.sum(wd_ref[...] * xt_ref[...], axis=0, keepdims=True)  # (1, TB)
    p1 = 1.0 / (1.0 + jnp.exp(-d))        # sigmoid of logit gap == 2-class softmax
    o_ref[...] = jnp.concatenate([1.0 - p1, p1], axis=0)           # (2, TB)


def dendro_logreg_forward(weight_list, x, num_features, lane_tile=2048):
    """weight_list: python list of (1, 2*num_features) arrays (leaf-to-root path).
    x: (B, num_features).  Returns (B, 2) softmax probabilities (PyTorch layout)."""
    F_ = num_features

    # ---- hoisted out of the kernel: path-weight reduction (tiny, done once) ----
    param_vector = jnp.sum(
        jnp.concatenate([w.reshape(1, 2 * F_) for w in weight_list], axis=0), axis=0
    )                                             # (2*F,)
    fc_w = param_vector.reshape(2, F_).astype(jnp.float32)          # (2, F)
    # softmax over 2 classes == sigmoid of logit difference
    w_diff = (fc_w[1] - fc_w[0]).reshape(F_, 1)                     # (F, 1)

    x = x.astype(jnp.float32)
    B = x.shape[0]

    # lane-dense batch tiling: TB is a multiple of 128, batch padded up to it
    TB = min(lane_tile, max(128, pl.next_power_of_2(B)))
    B_pad = pl.cdiv(B, TB) * TB
    xt = jnp.zeros((F_, B_pad), jnp.float32).at[:, :B].set(x.T)     # (F, B_pad)

    probs_t = pl.pallas_call(
        dendro_logreg_kernel,
        out_shape=jax.ShapeDtypeStruct((2, B_pad), jnp.float32),
        grid=(B_pad // TB,),
        in_specs=[
            pl.BlockSpec((F_, 1), lambda i: (0, 0)),    # weights: same block every step
            pl.BlockSpec((F_, TB), lambda i: (0, i)),   # x: streamed, double-buffered
        ],
        out_specs=pl.BlockSpec((2, TB), lambda i: (0, i)),
        compiler_params=pltpu.CompilerParams(dimension_semantics=("parallel",)),
    )(w_diff, xt)

    return probs_t[:, :B].T                                         # (B, 2)


# ---------------------------------------------------------------------------
# Tree plumbing (host-side glue, mirrors DendroLinReg.construct_model_tree)
# ---------------------------------------------------------------------------
class DataNode:
    def __init__(self, is_leaf=False):
        self.descendants = []
        self.is_leaf = is_leaf


class ModelNode:
    def __init__(self, weight, parent=None, is_leaf=False):
        self.weight = weight
        self.children = []
        self.parent = parent
        self.is_leaf = is_leaf
        self.weight_list = []


def build_model_tree(data_root, weight_dim, key):
    """Deterministic re-implementation of DendroLinReg.__init__ weight setup."""
    leaf_list = []
    key, sub = jax.random.split(key)
    # torch.nn.init.normal_(std=0.5) on the root weights
    root_w = 0.5 * jax.random.normal(sub, (1, weight_dim), jnp.float32)
    root = ModelNode(root_w)

    def construct(model_node, data_node, key):
        for data_child in data_node.descendants:
            if data_child.is_leaf:
                child_w = None  # no trainable weights into leaf nodes
            else:
                key, sub = jax.random.split(key)
                # torch.nn.init.normal_(std=0.0001) on internal-node weights
                child_w = 1e-4 * jax.random.normal(sub, (1, weight_dim), jnp.float32)
            child_node = ModelNode(child_w, parent=model_node,
                                   is_leaf=data_child.is_leaf)
            model_node.children.append(child_node)
            key = construct(child_node, data_child, key)
        if not model_node.is_leaf:
            model_node.weight_list.append(model_node.weight)
        p = model_node.parent
        while p is not None:
            model_node.weight_list.append(p.weight)
            p = p.parent
        if model_node.is_leaf:
            leaf_list.append(model_node)
        return key

    construct(root, data_root, key)
    return root, leaf_list


# ---------------------------------------------------------------------------
if __name__ == "__main__":
    num_features = 32
    weight_dim = num_features * 2

    # Small synthetic phylogeny: root -> A -> B -> {leaf0, leaf1}; A -> leaf2; root -> leaf3
    root_d = DataNode()
    a = DataNode(); b = DataNode()
    leaf0 = DataNode(is_leaf=True); leaf1 = DataNode(is_leaf=True)
    leaf2 = DataNode(is_leaf=True); leaf3 = DataNode(is_leaf=True)
    b.descendants = [leaf0, leaf1]
    a.descendants = [b, leaf2]
    root_d.descendants = [a, leaf3]

    key = jax.random.PRNGKey(0)
    key, wkey, xkey1, xkey2 = jax.random.split(key, 4)

    model_root, leaf_list = build_model_tree(root_d, weight_dim, wkey)
    leaf = leaf_list[0]  # path weights: [B, A, root] -> L = 3

    def reference(weight_list, x):
        pv = jnp.sum(jnp.concatenate(weight_list, axis=0), axis=0)
        fc_w = pv.reshape(2, num_features)
        return jax.nn.softmax(x @ fc_w.T, axis=-1)

    # --- check 1: tiny batch (single grid step, padded to one 128-lane tile) ---
    x1 = jax.random.normal(xkey1, (8, num_features), jnp.float32)
    out1 = jax.block_until_ready(dendro_logreg_forward(leaf.weight_list, x1, num_features))
    ref1 = reference(leaf.weight_list, x1)
    assert out1.shape == (8, 2)
    assert jnp.allclose(out1, ref1, atol=1e-5, rtol=1e-5), (out1, ref1)

    # --- check 2: multi-step grid with a ragged batch (exercises padding path) ---
    x2 = jax.random.normal(xkey2, (300, num_features), jnp.float32)
    out2 = jax.block_until_ready(
        dendro_logreg_forward(leaf.weight_list, x2, num_features, lane_tile=128))
    ref2 = reference(leaf.weight_list, x2)
    assert out2.shape == (300, 2)
    assert jnp.allclose(out2, ref2, atol=1e-5, rtol=1e-5)

    print("KERNEL_OK")
</pallas_src>

<mosaic_0001>
module attributes {stable_mosaic.version = 11 : i64} {
  func.func @dendro_logreg_kernel(%arg0: i32, %arg1: memref<32x1xf32, #tpu.memory_space<vmem>>, %arg2: memref<32x128xf32, #tpu.memory_space<vmem>>, %arg3: memref<2x128xf32, #tpu.memory_space<vmem>>) attributes {dimension_semantics = [#tpu.dimension_semantics<parallel>], iteration_bounds = array<i64: 1>, scalar_prefetch = 0 : i64, scratch_operands = 0 : i64, tpu.core_type = #tpu.core_type<tc>, window_params = [{pipeline_mode = #tpu.pipeline_mode<synchronous>, transform_indices = @transform_0, window_bounds = array<i64: 32, 1>}, {transform_indices = @transform_1, window_bounds = array<i64: 32, 128>}, {transform_indices = @transform_2, window_bounds = array<i64: 2, 128>}]} {
    %c0 = arith.constant 0 : index
    %c0_0 = arith.constant 0 : index
    %0 = vector.load %arg1[%c0, %c0_0] : memref<32x1xf32, #tpu.memory_space<vmem>>, vector<32x1xf32>
    %c0_1 = arith.constant 0 : index
    %c0_2 = arith.constant 0 : index
    %1 = vector.load %arg2[%c0_1, %c0_2] : memref<32x128xf32, #tpu.memory_space<vmem>>, vector<32x128xf32>
    %2 = vector.broadcast %0 : vector<32x1xf32> to vector<32x128xf32>
    %3 = arith.mulf %2, %1 : vector<32x128xf32>
    %cst = arith.constant dense<0.000000e+00> : vector<128xf32>
    %4 = vector.multi_reduction <add>, %3, %cst [0] : vector<32x128xf32> to vector<128xf32>
    %5 = vector.shape_cast %4 : vector<128xf32> to vector<1x128xf32>
    %cst_3 = arith.constant 0.000000e+00 : f32
    %6 = vector.broadcast %cst_3 : f32 to vector<1x128xf32>
    %7 = arith.subf %6, %5 : vector<1x128xf32>
    %8 = math.exp %7 : vector<1x128xf32>
    %cst_4 = arith.constant 1.000000e+00 : f32
    %9 = vector.broadcast %cst_4 : f32 to vector<1x128xf32>
    %10 = arith.addf %9, %8 : vector<1x128xf32>
    %cst_5 = arith.constant 1.000000e+00 : f32
    %11 = vector.broadcast %cst_5 : f32 to vector<1x128xf32>
    %12 = arith.divf %11, %10 : vector<1x128xf32>
    %cst_6 = arith.constant 1.000000e+00 : f32
    %13 = vector.broadcast %cst_6 : f32 to vector<1x128xf32>
    %14 = arith.subf %13, %12 : vector<1x128xf32>
    %15 = tpu.concatenate %14, %12 in 0 : vector<1x128xf32>, vector<1x128xf32> -> vector<2x128xf32>
    %c0_7 = arith.constant 0 : index
    %c0_8 = arith.constant 0 : index
    %16 = vector.load %arg3[%c0_7, %c0_8] : memref<2x128xf32, #tpu.memory_space<vmem>>, vector<2x128xf32>
    tpu.vector_store %arg3[%c0_7, %c0_8], %15 {strides = array<i32>} : memref<2x128xf32, #tpu.memory_space<vmem>>, vector<2x128xf32>,
    return
  }
  func.func @transform_0(%arg0: i32) -> (i32, i32) {
    %c0_i32 = arith.constant 0 : i32
    %c0_i32_0 = arith.constant 0 : i32
    %c0_i32_1 = arith.constant 0 : i32
    return %c0_i32, %c0_i32_0 : i32, i32
  }
  func.func @transform_1(%arg0: i32) -> (i32, i32) {
    %c0_i32 = arith.constant 0 : i32
    %c0_i32_0 = arith.constant 0 : i32
    return %c0_i32, %arg0 : i32, i32
  }
  func.func @transform_2(%arg0: i32) -> (i32, i32) {
    %c0_i32 = arith.constant 0 : i32
    %c0_i32_0 = arith.constant 0 : i32
    return %c0_i32, %arg0 : i32, i32
  }
}

</mosaic_0001>

<bundles_post_ra>
// kernel: tpu_custom_call.1
= control target key start
LH: loop header
LB: loop body
LE: loop exit
PB: predicated region body
PF: predicated region fallthrough
CT: control target
= control target key end

     0   :  { %v126_v2 = vmov 0   ;;  %s170_s0 = inlined_call_operand.vmem [shape: f32[32,1], index: 0, kind: input, shape index: {}]   ;;  %s171_s1 = inlined_call_operand.vmem [shape: f32[32,128], index: 1, kind: input, shape index: {}]   ;;  %s172_s2 = inlined_call_operand.hbm [shape: f32[2,128], index: 2, kind: output, shape index: {}]  }
   0x1   :  { %v14_v0 = vld [vmem:[%s170_s0 + $0x10] sm:$0xff]  ;;  %v12_v1 = vld [vmem:[%s170_s0] sm:$0xff]  ;;  %95 = vset.pattern.permute.xlu1 %v126_v2  ;;  %94 = vset.pattern.permute.xlu0 %v126_v2 }
   0x2   :  { %7 = vsyncpa [#allocation3], 0  ;;  %32 = vperm.xlu1 %95, %v14_v0   ;;  %22 = vperm.xlu0 %94, %v12_v1   ;;  %v15_v3 = vld [vmem:[%s170_s0 + $0x18] sm:$0xff]  ;;  %v13_v4 = vld [vmem:[%s170_s0 + $0x8] sm:$0xff]  ;;  %s83_s27 = sshll.u32 %s172_s2, 4  ;;  %vm73_vm4 = vcmask 1040384   ;;  %s84_s27 = int_to_ptr.hbm [resolvable:$true] %s83_s27 }
   0x3   :  { %v16_v7 = vld [vmem:[%s171_s1] sm:$0xff]  ;;  %v17_v8 = vld [vmem:[%s171_s1 + $0x8] sm:$0xff]  ;;  %v18_v9 = vld [vmem:[%s171_s1 + $0x10] sm:$0xff] }
   0x4   :  { %v19_v13 = vld [vmem:[%s171_s1 + $0x18] sm:$0xff]  ;;  %s127_s1 = smov [#allocation2]  }
   0x5   :  { %s81_s24 = sshll.u32 %s127_s1, 4  ;;  %s82_s24 = int_to_ptr.vmem [resolvable:$true] %s81_s24 }
   0xa   :  { %37 = vperm.xlu1 %95, %v15_v3   ;;  %27 = vperm.xlu0 %94, %v13_v4  }
  0x74   :  { %v33_v5 = vpop.permute.xlu1 %32  ;;  %v23_v6 = vpop.permute.xlu0 %22 }
  0x75   :  { %v40_v11 = vmul.f32 %v23_v6, %v16_v7  ;;  %v42_v15 = vmul.f32 %v33_v5, %v18_v9 }
  0x7c   :  { %v28_v10 = vpop.permute.xlu0 %27  ;;  %v38_v14 = vpop.permute.xlu1 %37 }
  0x7d   :  { %v41_v12 = vmul.f32 %v28_v10, %v17_v8  ;;  %v43_v17 = vmul.f32 %v38_v14, %v19_v13 }
  0x7f   :  { %v44_v16 = vadd.f32 %v41_v12, %v40_v11 }
  0x81   :  { %v45_v18 = vadd.f32 %v44_v16, %v42_v15 }
  0x83   :  { %v46_v19 = vadd.f32 %v45_v18, %v43_v17 }
  0x85   :  { %v47_v20 = vrot.slane %v46_v19, 4 }
  0x87   :  { %v48_v21 = vadd.f32 %v47_v20, %v46_v19 }
  0x89   :  { %v49_v22 = vrot.slane %v48_v21, 2 }
  0x8b   :  { %v50_v23 = vadd.f32 %v49_v22, %v48_v21 }
  0x8d   :  { %v51_v24 = vrot.slane %v50_v23, 1 }
  0x8f   :  { %v52_v25 = vadd.f32 %v51_v24, %v50_v23 }
  0x91   :  { %v53_v26 = vsub.f32 0.0, %v52_v25 }
  0x93   :  { %v54_v27 = vmul.f32 1.442695, %v53_v26 }
  0x95   :  { %96 = vpow2.f32 %v54_v27 }
  0x9b   :  { %v97_v28 = vpop.eup %96 }
  0x9c   :  { %v56_v29 = vadd.f32 1.0, %v97_v28 }
  0x9e   :  { %98 = vrcp.f32 %v56_v29  ;;  %v68_v33 = vand.u32 2147483648, %v56_v29  ;;  %v66_v35 = vand.u32 2147483647, %v56_v29  ;;  %vm62_vm1 = vweird.f32 %v56_v29 }
  0xa0   :  { %v69_v37 = vor.u32 1.1754944e-38, %v68_v33  ;;  %vm67_vm3 = vcmp.eq.f32.partialorder %v66_v35, 8.507059e+37 }
  0xa4   :  { %v99_v30 = vpop.eup %98 }
  0xa5   :  { %v58_v31 = vmul.f32 %v99_v30, %v56_v29  ;;  %vm63_vm0 = vweird.f32 %v99_v30 }
  0xa6   :  { %vm64_vm2 = vmor %vm62_vm1, %vm63_vm0 }
  0xa7   :  { %v59_v32 = vsub.f32 1.0, %v58_v31 }
  0xa9   :  { %v60_v34 = vmul.f32 %v99_v30, %v59_v32 }
  0xab   :  { %v61_v36 = vadd.f32 %v99_v30, %v60_v34 }
  0xad   :  { %v65_v38 = vsel %vm64_vm2, %v99_v30, %v61_v36 }
  0xae   :  { %v70_v39 = vsel %vm67_vm3, %v69_v37, %v65_v38 }
  0xaf   :  { %v72_v40 = vsub.f32 1.0, %v70_v39 }
  0xb1   :  { %v74_v41 = vsel %vm73_vm4, %v72_v40, %v70_v39 }
  0xb2   :  { %75 = vst [vmem:[#allocation2] sm:$0x3] %v74_v41 }
  0xb3   :  { %86 = dma.vmem_to_hbm [thread:$0]  %s82_s24, 32, %s84_s27, [#allocation3]  }
  0xb4   :  { %124 = dma.done.wait [#allocation3], 32  }
  0xb5   :  { %125 = vsyncadd [#allocation3], 4294967264 }
  0xb6   :  { %91 = vsyncpa [#allocation3], 1 }

</bundles_post_ra>
